<compile_context>
chip_gen: v6e
topology: v6e:2x2x1
jax: 0.10.0
libtpu: 0.0.40
codegen_flags: <defaults>
</compile_context>

<pallas_src>
import functools
import math

import jax
import jax.numpy as jnp
from jax.experimental import pallas as pl
from jax.experimental.pallas import tpu as pltpu


_LANE = 128      # lane width (last-dim alignment)
_SUBLANE = 8     # sublane alignment (second-to-last dim, f32)

_CompilerParams = getattr(pltpu, "CompilerParams", None)
if _CompilerParams is None:                       # older jax fallback
    _CompilerParams = getattr(pltpu, "TPUCompilerParams")


# ----------------------------- Pallas kernels ------------------------------

def _matmul_bias_act_fullk_kernel(x_ref, w_ref, b_ref, o_ref, *, relu):
    """out = act(x @ w + b), whole reduction in one block (no accumulator)."""
    out = jnp.dot(x_ref[...], w_ref[...], preferred_element_type=jnp.float32)
    out = out + b_ref[...]
    if relu:
        out = jnp.maximum(out, 0.0)
    o_ref[...] = out.astype(o_ref.dtype)


def _matmul_bias_act_ktiled_kernel(x_ref, w_ref, b_ref, o_ref, acc_ref, *, relu):
    """K-tiled fallback with f32 VMEM accumulator (P3 init/finalize)."""
    @pl.when(pl.program_id(1) == 0)
    def _():
        acc_ref[...] = jnp.zeros_like(acc_ref)

    acc_ref[...] += jnp.dot(x_ref[...], w_ref[...],
                            preferred_element_type=jnp.float32)

    @pl.when(pl.program_id(1) == pl.num_programs(1) - 1)
    def _():
        out = acc_ref[...] + b_ref[...]
        if relu:
            out = jnp.maximum(out, 0.0)
        o_ref[...] = out.astype(o_ref.dtype)


def _linear_posenc_fullk_kernel(x_ref, w_ref, b_ref, pe_ref, o_ref, *, xscale):
    """out[b, t_tile] = (x @ w + b) * xscale + pe[t_tile]  (pe shared over batch)."""
    out = jnp.dot(x_ref[0], w_ref[...], preferred_element_type=jnp.float32)
    o_ref[0] = ((out + b_ref[...]) * xscale + pe_ref[...]).astype(o_ref.dtype)


def _linear_posenc_ktiled_kernel(x_ref, w_ref, b_ref, pe_ref, o_ref, acc_ref,
                                 *, xscale):
    @pl.when(pl.program_id(2) == 0)
    def _():
        acc_ref[...] = jnp.zeros_like(acc_ref)

    acc_ref[...] += jnp.dot(x_ref[0], w_ref[...],
                            preferred_element_type=jnp.float32)

    @pl.when(pl.program_id(2) == pl.num_programs(2) - 1)
    def _():
        o_ref[0] = ((acc_ref[...] + b_ref[...]) * xscale
                    + pe_ref[...]).astype(o_ref.dtype)


# --------------------------- planning helpers --------------------------------

def _round_up(n, m):
    return (n + m - 1) // m * m


def _vmem_capacity_bytes():
    # Generation-aware physical VMEM; fall back to the v7x floor (64 MiB).
    try:
        return int(pltpu.get_tpu_info().vmem_capacity_bytes)
    except Exception:  # noqa: BLE001 - any failure -> conservative default
        return 64 << 20


def _vmem_budget():
    cap = _vmem_capacity_bytes()
    # leave headroom for compiler-internal scratch; never below 32 MiB.
    return max(cap - (12 << 20), 32 << 20)


def _pick_row_tile(dim, target):
    if dim <= target:
        return _round_up(max(dim, 1), _SUBLANE)
    return target


def _plan_matmul(M, K, n_pad, in_b, out_b, tile_m, budget):
    """Pick (tm, tk, k_pad, full_k, vmem_need).  Prefer full-K resident weight."""
    tm = _pick_row_tile(M, tile_m)
    while True:
        need = (2 * tm * K * in_b            # LHS, double-buffered
                + 2 * K * n_pad * in_b       # weight (resident but 2 bufs)
                + 2 * tm * n_pad * out_b     # output, double-buffered
                + 2 * n_pad * 4)             # bias
        if need <= budget or tm <= 256:
            break
        tm = max(_round_up(tm // 2, _SUBLANE), _SUBLANE)
    if need <= budget:
        return tm, K, K, True, need

    # K-tiled fallback: exact 128-multiple divisor of K if possible (no k pad).
    tk = 0
    if K % _LANE == 0:
        for cand in range(512, 0, -_LANE):
            if K % cand == 0:
                tk = cand
                break
    if tk == 0:
        tk = 512
    k_pad = _round_up(K, tk)
    need = (2 * tm * tk * in_b + 2 * tk * n_pad * in_b
            + 2 * tm * n_pad * out_b + tm * n_pad * 4 + 2 * n_pad * 4)
    return tm, tk, k_pad, False, need


# ------------------------------ call wrappers --------------------------------

def pallas_matmul_bias_act(x, w, b, *, relu, out_dtype,
                           compute_dtype=jnp.bfloat16, tile_m=1024):
    """act(x @ w + b), row-tiled grid; resident weight when it fits VMEM.

    x: (M, K), w: (K, N), b: (N,).  Returns padded (M_pad, N_pad); padded
    output channels are exactly zero (zero weights / bias); callers slice.
    """
    M, K = x.shape
    Kw, N = w.shape
    assert Kw == K

    n_pad = _round_up(N, _LANE)
    in_b = jnp.dtype(compute_dtype).itemsize
    out_b = jnp.dtype(out_dtype).itemsize
    budget = _vmem_budget()
    tm, tk, k_pad, full_k, need = _plan_matmul(M, K, n_pad, in_b, out_b,
                                               tile_m, budget)
    m_pad = _round_up(M, tm)

    xp = x.astype(compute_dtype)
    if m_pad != M or k_pad != K:
        xp = jnp.pad(xp, ((0, m_pad - M), (0, k_pad - K)))
    wp = w.astype(compute_dtype)
    if k_pad != K or n_pad != N:
        wp = jnp.pad(wp, ((0, k_pad - K), (0, n_pad - N)))
    bp = jnp.pad(b.astype(jnp.float32), (0, n_pad - N)).reshape(1, n_pad)

    cost = pl.CostEstimate(
        flops=2 * m_pad * k_pad * n_pad, transcendentals=0,
        bytes_accessed=(m_pad * k_pad + k_pad * n_pad) * in_b
        + m_pad * n_pad * out_b + n_pad * 4)
    vmem_limit = int(min(max(need + (4 << 20), 32 << 20), budget))

    if full_k:
        return pl.pallas_call(
            functools.partial(_matmul_bias_act_fullk_kernel, relu=relu),
            out_shape=jax.ShapeDtypeStruct((m_pad, n_pad), out_dtype),
            grid=(m_pad // tm,),
            in_specs=[
                pl.BlockSpec((tm, K), lambda i: (i, 0)),
                pl.BlockSpec((K, n_pad), lambda i: (0, 0)),   # resident weight
                pl.BlockSpec((1, n_pad), lambda i: (0, 0)),   # resident bias
            ],
            out_specs=pl.BlockSpec((tm, n_pad), lambda i: (i, 0)),
            compiler_params=_CompilerParams(
                dimension_semantics=("parallel",),
                vmem_limit_bytes=vmem_limit),
            cost_estimate=cost,
        )(xp, wp, bp)

    return pl.pallas_call(
        functools.partial(_matmul_bias_act_ktiled_kernel, relu=relu),
        out_shape=jax.ShapeDtypeStruct((m_pad, n_pad), out_dtype),
        grid=(m_pad // tm, k_pad // tk),
        in_specs=[
            pl.BlockSpec((tm, tk), lambda i, k: (i, k)),
            pl.BlockSpec((tk, n_pad), lambda i, k: (k, 0)),
            pl.BlockSpec((1, n_pad), lambda i, k: (0, 0)),
        ],
        out_specs=pl.BlockSpec((tm, n_pad), lambda i, k: (i, 0)),
        scratch_shapes=[pltpu.VMEM((tm, n_pad), jnp.float32)],
        compiler_params=_CompilerParams(
            dimension_semantics=("parallel", "arbitrary"),
            vmem_limit_bytes=vmem_limit),
        cost_estimate=cost,
    )(xp, wp, bp)


def pallas_linear_posenc(x_btk, w, b, pe, *, xscale, out_dtype=jnp.float32,
                         compute_dtype=jnp.bfloat16, tile_t=512):
    """(x @ w + b) * xscale + pe[None], batched over the leading axis.

    x_btk: (B, T, K), w: (K, N), b: (N,), pe: (T, N_true) shared across batch.
    Returns padded (B, T_pad, N_pad); caller slices.
    """
    B, T, K = x_btk.shape
    Kw, N = w.shape
    assert Kw == K

    n_pad = _round_up(N, _LANE)
    in_b = jnp.dtype(compute_dtype).itemsize
    out_b = jnp.dtype(out_dtype).itemsize
    budget = _vmem_budget()
    tt, tk, k_pad, full_k, need = _plan_matmul(T, K, n_pad, in_b, out_b,
                                               tile_t, budget)
    need += 2 * tt * n_pad * 4           # pe block
    t_pad = _round_up(T, tt)

    xp = x_btk.astype(compute_dtype)
    if t_pad != T or k_pad != K:
        xp = jnp.pad(xp, ((0, 0), (0, t_pad - T), (0, k_pad - K)))
    wp = w.astype(compute_dtype)
    if k_pad != K or n_pad != N:
        wp = jnp.pad(wp, ((0, k_pad - K), (0, n_pad - N)))
    bp = jnp.pad(b.astype(jnp.float32), (0, n_pad - N)).reshape(1, n_pad)
    pep = jnp.pad(pe.astype(jnp.float32),
                  ((0, t_pad - pe.shape[0]), (0, n_pad - pe.shape[1])))

    cost = pl.CostEstimate(
        flops=2 * B * t_pad * k_pad * n_pad, transcendentals=0,
        bytes_accessed=(B * t_pad * k_pad + k_pad * n_pad) * in_b
        + B * t_pad * n_pad * out_b + (t_pad * n_pad + n_pad) * 4)
    vmem_limit = int(min(max(need + (4 << 20), 32 << 20), budget))

    if full_k:
        return pl.pallas_call(
            functools.partial(_linear_posenc_fullk_kernel, xscale=xscale),
            out_shape=jax.ShapeDtypeStruct((B, t_pad, n_pad), out_dtype),
            grid=(B, t_pad // tt),
            in_specs=[
                pl.BlockSpec((1, tt, K), lambda bi, ti: (bi, ti, 0)),
                pl.BlockSpec((K, n_pad), lambda bi, ti: (0, 0)),   # resident
                pl.BlockSpec((1, n_pad), lambda bi, ti: (0, 0)),   # resident
                # pe ignores the batch index -> no broadcast, no per-batch copy
                pl.BlockSpec((tt, n_pad), lambda bi, ti: (ti, 0)),
            ],
            out_specs=pl.BlockSpec((1, tt, n_pad), lambda bi, ti: (bi, ti, 0)),
            compiler_params=_CompilerParams(
                dimension_semantics=("parallel", "parallel"),
                vmem_limit_bytes=vmem_limit),
            cost_estimate=cost,
        )(xp, wp, bp, pep)

    return pl.pallas_call(
        functools.partial(_linear_posenc_ktiled_kernel, xscale=xscale),
        out_shape=jax.ShapeDtypeStruct((B, t_pad, n_pad), out_dtype),
        grid=(B, t_pad // tt, k_pad // tk),
        in_specs=[
            pl.BlockSpec((1, tt, tk), lambda bi, ti, ki: (bi, ti, ki)),
            pl.BlockSpec((tk, n_pad), lambda bi, ti, ki: (ki, 0)),
            pl.BlockSpec((1, n_pad), lambda bi, ti, ki: (0, 0)),
            pl.BlockSpec((tt, n_pad), lambda bi, ti, ki: (ti, 0)),
        ],
        out_specs=pl.BlockSpec((1, tt, n_pad), lambda bi, ti, ki: (bi, ti, 0)),
        scratch_shapes=[pltpu.VMEM((tt, n_pad), jnp.float32)],
        compiler_params=_CompilerParams(
            dimension_semantics=("parallel", "parallel", "arbitrary"),
            vmem_limit_bytes=vmem_limit),
        cost_estimate=cost,
    )(xp, wp, bp, pep)


# ------------------------------- JAX glue -----------------------------------

def _im2col_nhwc(x, kh, kw, sh, sw):
    """x: (B, H, W, C) -> patches (B, Ho, Wo, C*kh*kw), channel-major columns
    (c, i, j) matching PyTorch OIHW weights flattened as (C_out, C_in*kh*kw)."""
    B, H, W, C = x.shape
    Ho = (H - kh) // sh + 1
    Wo = (W - kw) // sw + 1
    cols = []
    for i in range(kh):
        for j in range(kw):
            cols.append(x[:, i:i + sh * Ho:sh, j:j + sw * Wo:sw, :])  # (B,Ho,Wo,C)
    p = jnp.stack(cols, axis=-1)                 # (B, Ho, Wo, C, kh*kw)
    return p.reshape(B, Ho, Wo, C * kh * kw), Ho, Wo


def _sinusoid_pe(max_len, d_model):
    position = jnp.arange(max_len, dtype=jnp.float32)[:, None]
    div_term = jnp.exp(
        jnp.arange(0, d_model, 2, dtype=jnp.float32)
        * -(math.log(10000.0) / d_model))
    pe = jnp.zeros((max_len, d_model), dtype=jnp.float32)
    pe = pe.at[:, 0::2].set(jnp.sin(position * div_term))
    pe = pe.at[:, 1::2].set(jnp.cos(position * div_term))
    return pe


def init_params(key, idim, odim, max_len=512):
    k1, k2, k3, k4, k5, k6 = jax.random.split(key, 6)
    f_out = ((idim - 1) // 2 - 1) // 2
    return {
        "w1": 0.1 * jax.random.normal(k1, (odim, 1, 3, 3), jnp.float32),
        "b1": 0.1 * jax.random.normal(k2, (odim,), jnp.float32),
        "w2": 0.05 * jax.random.normal(k3, (odim, odim, 3, 3), jnp.float32),
        "b2": 0.1 * jax.random.normal(k4, (odim,), jnp.float32),
        "w_lin": 0.05 * jax.random.normal(k5, (odim, odim * f_out), jnp.float32),
        "b_lin": 0.1 * jax.random.normal(k6, (odim,), jnp.float32),
        "pe": _sinusoid_pe(max_len, odim),
    }


def conv2d_subsampling4_forward(x, x_mask, params, offset=0):
    """x: (B, T, idim) float32,  x_mask: (B, 1, T) bool."""
    B, T, idim = x.shape
    odim = params["w1"].shape[0]

    # --- conv1 (1 -> odim, 3x3, stride 2) + ReLU, as im2col matmul ---
    # K=9 is tiny -> stays f32 (no cast copy, tighter parity), big row tiles.
    p1, T1, F1 = _im2col_nhwc(x[:, :, :, None], 3, 3, 2, 2)          # (B,T1,F1,9)
    M1 = B * T1 * F1
    w1m = params["w1"].reshape(odim, 9).T                            # (9, odim)
    y1 = pallas_matmul_bias_act(p1.reshape(M1, 9), w1m, params["b1"],
                                relu=True, out_dtype=jnp.bfloat16,
                                compute_dtype=jnp.float32, tile_m=4096)
    y1 = y1[:M1, :odim].reshape(B, T1, F1, odim)                     # NHWC

    # --- conv2 (odim -> odim, 3x3, stride 2) + ReLU ---
    p2, T2, F2 = _im2col_nhwc(y1, 3, 3, 2, 2)                        # (B,T2,F2,odim*9)
    M2 = B * T2 * F2
    w2m = params["w2"].reshape(odim, odim * 9).T                     # (odim*9, odim)
    y2 = pallas_matmul_bias_act(p2.reshape(M2, odim * 9), w2m, params["b2"],
                                relu=True, out_dtype=jnp.bfloat16,
                                compute_dtype=jnp.bfloat16, tile_m=1024)
    n_pad2 = y2.shape[1]                                             # odim -> mult of 128
    # Keep padded channel columns (exactly zero); no (b,t,f,c)->(b,t,c,f)
    # activation transpose: fold the permutation into the Linear weight.
    y2 = y2[:M2].reshape(B, T2, F2 * n_pad2)

    wl = params["w_lin"].reshape(odim, odim, F2)                     # [n, c, f]
    wl = jnp.transpose(wl, (2, 1, 0))                                # [f, c, n]
    wl = jnp.pad(wl, ((0, 0), (0, n_pad2 - odim), (0, 0)))           # zero rows for pad c
    wl = wl.reshape(F2 * n_pad2, odim)                               # (K_lin, odim)

    # --- Linear + positional encoding (x*sqrt(odim) + pe), dropout=identity ---
    assert offset + T2 <= params["pe"].shape[0], "pe table too short for input"
    xscale = math.sqrt(odim)
    pe_slice = params["pe"][offset:offset + T2]                      # (T2, odim)
    out = pallas_linear_posenc(y2, wl, params["b_lin"], pe_slice,
                               xscale=xscale, out_dtype=jnp.float32, tile_t=512)
    out = out[:, :T2, :odim]                                         # (B, T2, odim)

    pos_emb = pe_slice[None, :, :]                                   # (1, T2, odim)
    mask_sub = x_mask[:, :, 2::2][:, :, 2::2]                        # (B, 1, T2)
    return out, pos_emb, mask_sub


# --------------------------- pure-JAX reference ------------------------------

def reference_forward(x, x_mask, params, offset=0):
    odim = params["w1"].shape[0]
    xn = x[:, None, :, :]
    y1 = jax.lax.conv_general_dilated(
        xn, params["w1"], (2, 2), "VALID",
        dimension_numbers=("NCHW", "OIHW", "NCHW"))
    y1 = jax.nn.relu(y1 + params["b1"][None, :, None, None])
    y2 = jax.lax.conv_general_dilated(
        y1, params["w2"], (2, 2), "VALID",
        dimension_numbers=("NCHW", "OIHW", "NCHW"))
    y2 = jax.nn.relu(y2 + params["b2"][None, :, None, None])
    b, c, t, f = y2.shape
    y2 = y2.transpose(0, 2, 1, 3).reshape(b, t, c * f)
    lin = y2 @ params["w_lin"].T + params["b_lin"]
    pos_emb = params["pe"][offset:offset + t][None]
    out = lin * math.sqrt(odim) + pos_emb
    return out, pos_emb, x_mask[:, :, 2::2][:, :, 2::2]


# ---------------------------------- main -------------------------------------

if __name__ == "__main__":
    B, T, idim, odim = 2, 16, 16, 32
    key = jax.random.PRNGKey(0)
    kx, kp = jax.random.split(key)

    x = jax.random.normal(kx, (B, T, idim), jnp.float32)
    x_mask = jnp.ones((B, 1, T), dtype=jnp.bool_)
    params = init_params(kp, idim, odim)

    fwd = jax.jit(conv2d_subsampling4_forward, static_argnames=("offset",))
    out, pos_emb, mask = fwd(x, x_mask, params, offset=0)
    out = jax.block_until_ready(out)
    pos_emb = jax.block_until_ready(pos_emb)
    mask = jax.block_until_ready(mask)

    ref_out, ref_pe, ref_mask = reference_forward(x, x_mask, params)
    assert out.shape == (B, T // 4 - 1, odim), out.shape          # (2, 3, 32)
    assert pos_emb.shape == (1, T // 4 - 1, odim)
    assert mask.shape == (B, 1, T // 4 - 1)
    # conv2/linear use bf16 MXU inputs with f32 accumulation -> relaxed tol.
    max_err = float(jnp.max(jnp.abs(out - ref_out)))
    assert jnp.allclose(out, ref_out, rtol=5e-2, atol=5e-2), max_err
    assert jnp.allclose(pos_emb, ref_pe, rtol=1e-5, atol=1e-5)
    assert jnp.array_equal(mask, ref_mask)

    # TODO(synk): dropout in self.out / pos_enc is identity here (eval mode).
    print("KERNEL_OK")
</pallas_src>

<mosaic_0001>
module attributes {stable_mosaic.version = 11 : i64} {
  func.func @_matmul_bias_act_fullk_kernel(%arg0: i32, %arg1: memref<104x9xf32, #tpu.memory_space<vmem>>, %arg2: memref<9x128xf32, #tpu.memory_space<vmem>>, %arg3: memref<1x128xf32, #tpu.memory_space<vmem>>, %arg4: memref<104x128xbf16, #tpu.memory_space<vmem>>) attributes {dimension_semantics = [#tpu.dimension_semantics<parallel>], iteration_bounds = array<i64: 1>, scalar_prefetch = 0 : i64, scratch_operands = 0 : i64, tpu.core_type = #tpu.core_type<tc>, window_params = [{transform_indices = @transform_0, window_bounds = array<i64: 104, 9>}, {pipeline_mode = #tpu.pipeline_mode<synchronous>, transform_indices = @transform_1, window_bounds = array<i64: 9, 128>}, {pipeline_mode = #tpu.pipeline_mode<synchronous>, transform_indices = @transform_2, window_bounds = array<i64: 1, 128>}, {transform_indices = @transform_3, window_bounds = array<i64: 104, 128>}]} {
    %c0 = arith.constant 0 : index
    %c0_0 = arith.constant 0 : index
    %0 = vector.load %arg1[%c0, %c0_0] : memref<104x9xf32, #tpu.memory_space<vmem>>, vector<104x9xf32>
    %c0_1 = arith.constant 0 : index
    %c0_2 = arith.constant 0 : index
    %1 = vector.load %arg2[%c0_1, %c0_2] : memref<9x128xf32, #tpu.memory_space<vmem>>, vector<9x128xf32>
    %cst = arith.constant dense<0.000000e+00> : vector<104x128xf32>
    %2 = tpu.matmul %0, %1, %cst {dimension_numbers = #tpu.dot_dimension_numbers<[1], [0], [0], [1], [0, 0, 1, 1], [], []>} : vector<104x9xf32>, vector<9x128xf32>, vector<104x128xf32> -> vector<104x128xf32>
    %c0_3 = arith.constant 0 : index
    %c0_4 = arith.constant 0 : index
    %3 = vector.load %arg3[%c0_3, %c0_4] : memref<1x128xf32, #tpu.memory_space<vmem>>, vector<1x128xf32>
    %4 = vector.broadcast %3 : vector<1x128xf32> to vector<104x128xf32>
    %5 = arith.addf %2, %4 : vector<104x128xf32>
    %cst_5 = arith.constant 0.000000e+00 : f32
    %6 = vector.broadcast %cst_5 : f32 to vector<104x128xf32>
    %7 = arith.maximumf %5, %6 : vector<104x128xf32>
    %8 = arith.truncf %7 : vector<104x128xf32> to vector<104x128xbf16>
    %c0_6 = arith.constant 0 : index
    %c0_7 = arith.constant 0 : index
    %9 = vector.load %arg4[%c0_6, %c0_7] : memref<104x128xbf16, #tpu.memory_space<vmem>>, vector<104x128xbf16>
    tpu.vector_store %arg4[%c0_6, %c0_7], %8 {strides = array<i32>} : memref<104x128xbf16, #tpu.memory_space<vmem>>, vector<104x128xbf16>,
    return
  }
  func.func @transform_0(%arg0: i32) -> (i32, i32) {
    %c0_i32 = arith.constant 0 : i32
    %c0_i32_0 = arith.constant 0 : i32
    return %arg0, %c0_i32 : i32, i32
  }
  func.func @transform_1(%arg0: i32) -> (i32, i32) {
    %c0_i32 = arith.constant 0 : i32
    %c0_i32_0 = arith.constant 0 : i32
    %c0_i32_1 = arith.constant 0 : i32
    return %c0_i32, %c0_i32_0 : i32, i32
  }
  func.func @transform_2(%arg0: i32) -> (i32, i32) {
    %c0_i32 = arith.constant 0 : i32
    %c0_i32_0 = arith.constant 0 : i32
    %c0_i32_1 = arith.constant 0 : i32
    return %c0_i32, %c0_i32_0 : i32, i32
  }
  func.func @transform_3(%arg0: i32) -> (i32, i32) {
    %c0_i32 = arith.constant 0 : i32
    %c0_i32_0 = arith.constant 0 : i32
    return %arg0, %c0_i32 : i32, i32
  }
}

module attributes {stable_mosaic.version = 11 : i64} {
  func.func @_matmul_bias_act_fullk_kernel(%arg0: i32, %arg1: memref<24x288xbf16, #tpu.memory_space<vmem>>, %arg2: memref<288x128xbf16, #tpu.memory_space<vmem>>, %arg3: memref<1x128xf32, #tpu.memory_space<vmem>>, %arg4: memref<24x128xbf16, #tpu.memory_space<vmem>>) attributes {dimension_semantics = [#tpu.dimension_semantics<parallel>], iteration_bounds = array<i64: 1>, scalar_prefetch = 0 : i64, scratch_operands = 0 : i64, tpu.core_type = #tpu.core_type<tc>, window_params = [{transform_indices = @transform_0, window_bounds = array<i64: 24, 288>}, {pipeline_mode = #tpu.pipeline_mode<synchronous>, transform_indices = @transform_1, window_bounds = array<i64: 288, 128>}, {pipeline_mode = #tpu.pipeline_mode<synchronous>, transform_indices = @transform_2, window_bounds = array<i64: 1, 128>}, {transform_indices = @transform_3, window_bounds = array<i64: 24, 128>}]} {
    %c0 = arith.constant 0 : index
    %c0_0 = arith.constant 0 : index
    %0 = vector.load %arg1[%c0, %c0_0] : memref<24x288xbf16, #tpu.memory_space<vmem>>, vector<24x288xbf16>
    %c0_1 = arith.constant 0 : index
    %c0_2 = arith.constant 0 : index
    %1 = vector.load %arg2[%c0_1, %c0_2] : memref<288x128xbf16, #tpu.memory_space<vmem>>, vector<288x128xbf16>
    %cst = arith.constant dense<0.000000e+00> : vector<24x128xf32>
    %2 = tpu.matmul %0, %1, %cst {dimension_numbers = #tpu.dot_dimension_numbers<[1], [0], [0], [1], [0, 0, 1, 1], [], []>} : vector<24x288xbf16>, vector<288x128xbf16>, vector<24x128xf32> -> vector<24x128xf32>
    %c0_3 = arith.constant 0 : index
    %c0_4 = arith.constant 0 : index
    %3 = vector.load %arg3[%c0_3, %c0_4] : memref<1x128xf32, #tpu.memory_space<vmem>>, vector<1x128xf32>
    %4 = vector.broadcast %3 : vector<1x128xf32> to vector<24x128xf32>
    %5 = arith.addf %2, %4 : vector<24x128xf32>
    %cst_5 = arith.constant 0.000000e+00 : f32
    %6 = vector.broadcast %cst_5 : f32 to vector<24x128xf32>
    %7 = arith.maximumf %5, %6 : vector<24x128xf32>
    %8 = arith.truncf %7 : vector<24x128xf32> to vector<24x128xbf16>
    %c0_6 = arith.constant 0 : index
    %c0_7 = arith.constant 0 : index
    %9 = vector.load %arg4[%c0_6, %c0_7] : memref<24x128xbf16, #tpu.memory_space<vmem>>, vector<24x128xbf16>
    tpu.vector_store %arg4[%c0_6, %c0_7], %8 {strides = array<i32>} : memref<24x128xbf16, #tpu.memory_space<vmem>>, vector<24x128xbf16>,
    return
  }
  func.func @transform_0(%arg0: i32) -> (i32, i32) {
    %c0_i32 = arith.constant 0 : i32
    %c0_i32_0 = arith.constant 0 : i32
    return %arg0, %c0_i32 : i32, i32
  }
  func.func @transform_1(%arg0: i32) -> (i32, i32) {
    %c0_i32 = arith.constant 0 : i32
    %c0_i32_0 = arith.constant 0 : i32
    %c0_i32_1 = arith.constant 0 : i32
    return %c0_i32, %c0_i32_0 : i32, i32
  }
  func.func @transform_2(%arg0: i32) -> (i32, i32) {
    %c0_i32 = arith.constant 0 : i32
    %c0_i32_0 = arith.constant 0 : i32
    %c0_i32_1 = arith.constant 0 : i32
    return %c0_i32, %c0_i32_0 : i32, i32
  }
  func.func @transform_3(%arg0: i32) -> (i32, i32) {
    %c0_i32 = arith.constant 0 : i32
    %c0_i32_0 = arith.constant 0 : i32
    return %arg0, %c0_i32 : i32, i32
  }
}

module attributes {stable_mosaic.version = 11 : i64} {
  func.func @_linear_posenc_fullk_kernel(%arg0: i32, %arg1: i32, %arg2: memref<1x8x384xbf16, #tpu.memory_space<vmem>>, %arg3: memref<384x128xbf16, #tpu.memory_space<vmem>>, %arg4: memref<1x128xf32, #tpu.memory_space<vmem>>, %arg5: memref<8x128xf32, #tpu.memory_space<vmem>>, %arg6: memref<1x8x128xf32, #tpu.memory_space<vmem>>) attributes {dimension_semantics = [#tpu.dimension_semantics<parallel>, #tpu.dimension_semantics<parallel>], iteration_bounds = array<i64: 2, 1>, scalar_prefetch = 0 : i64, scratch_operands = 0 : i64, tpu.core_type = #tpu.core_type<tc>, window_params = [{transform_indices = @transform_0, window_bounds = array<i64: 1, 8, 384>}, {pipeline_mode = #tpu.pipeline_mode<synchronous>, transform_indices = @transform_1, window_bounds = array<i64: 384, 128>}, {pipeline_mode = #tpu.pipeline_mode<synchronous>, transform_indices = @transform_2, window_bounds = array<i64: 1, 128>}, {transform_indices = @transform_3, window_bounds = array<i64: 8, 128>}, {transform_indices = @transform_4, window_bounds = array<i64: 1, 8, 128>}]} {
    %c0 = arith.constant 0 : index
    %c0_0 = arith.constant 0 : index
    %c0_1 = arith.constant 0 : index
    %0 = vector.load %arg2[%c0, %c0_0, %c0_1] : memref<1x8x384xbf16, #tpu.memory_space<vmem>>, vector<1x8x384xbf16>
    %1 = vector.shape_cast %0 : vector<1x8x384xbf16> to vector<8x384xbf16>
    %c0_2 = arith.constant 0 : index
    %c0_3 = arith.constant 0 : index
    %2 = vector.load %arg3[%c0_2, %c0_3] : memref<384x128xbf16, #tpu.memory_space<vmem>>, vector<384x128xbf16>
    %cst = arith.constant dense<0.000000e+00> : vector<8x128xf32>
    %3 = tpu.matmul %1, %2, %cst {dimension_numbers = #tpu.dot_dimension_numbers<[1], [0], [0], [1], [0, 0, 1, 1], [], []>} : vector<8x384xbf16>, vector<384x128xbf16>, vector<8x128xf32> -> vector<8x128xf32>
    %c0_4 = arith.constant 0 : index
    %c0_5 = arith.constant 0 : index
    %4 = vector.load %arg4[%c0_4, %c0_5] : memref<1x128xf32, #tpu.memory_space<vmem>>, vector<1x128xf32>
    %5 = vector.broadcast %4 : vector<1x128xf32> to vector<8x128xf32>
    %6 = arith.addf %3, %5 : vector<8x128xf32>
    %cst_6 = arith.constant 5.65685415 : f32
    %7 = vector.broadcast %cst_6 : f32 to vector<8x128xf32>
    %8 = arith.mulf %6, %7 : vector<8x128xf32>
    %c0_7 = arith.constant 0 : index
    %c0_8 = arith.constant 0 : index
    %9 = vector.load %arg5[%c0_7, %c0_8] : memref<8x128xf32, #tpu.memory_space<vmem>>, vector<8x128xf32>
    %10 = arith.addf %8, %9 : vector<8x128xf32>
    %c0_9 = arith.constant 0 : index
    %c0_10 = arith.constant 0 : index
    %c0_11 = arith.constant 0 : index
    %11 = vector.load %arg6[%c0_9, %c0_10, %c0_11] : memref<1x8x128xf32, #tpu.memory_space<vmem>>, vector<1x8x128xf32>
    %12 = vector.shape_cast %11 : vector<1x8x128xf32> to vector<8x128xf32>
    %13 = vector.shape_cast %10 : vector<8x128xf32> to vector<1x8x128xf32>
    tpu.vector_store %arg6[%c0_9, %c0_10, %c0_11], %13 {strides = array<i32>} : memref<1x8x128xf32, #tpu.memory_space<vmem>>, vector<1x8x128xf32>,
    return
  }
  func.func @transform_0(%arg0: i32, %arg1: i32) -> (i32, i32, i32) {
    %c0_i32 = arith.constant 0 : i32
    %c0_i32_0 = arith.constant 0 : i32
    return %arg0, %arg1, %c0_i32 : i32, i32, i32
  }
  func.func @transform_1(%arg0: i32, %arg1: i32) -> (i32, i32) {
    %c0_i32 = arith.constant 0 : i32
    %c0_i32_0 = arith.constant 0 : i32
    %c0_i32_1 = arith.constant 0 : i32
    return %c0_i32, %c0_i32_0 : i32, i32
  }
  func.func @transform_2(%arg0: i32, %arg1: i32) -> (i32, i32) {
    %c0_i32 = arith.constant 0 : i32
    %c0_i32_0 = arith.constant 0 : i32
    %c0_i32_1 = arith.constant 0 : i32
    return %c0_i32, %c0_i32_0 : i32, i32
  }
  func.func @transform_3(%arg0: i32, %arg1: i32) -> (i32, i32) {
    %c0_i32 = arith.constant 0 : i32
    %c0_i32_0 = arith.constant 0 : i32
    return %arg1, %c0_i32 : i32, i32
  }
  func.func @transform_4(%arg0: i32, %arg1: i32) -> (i32, i32, i32) {
    %c0_i32 = arith.constant 0 : i32
    %c0_i32_0 = arith.constant 0 : i32
    return %arg0, %arg1, %c0_i32 : i32, i32, i32
  }
}

</mosaic_0001>

<bundles_post_ra>
// kernel: conv2d_subsampling4_forward.3
= control target key start
LH: loop header
LB: loop body
LE: loop exit
PB: predicated region body
PF: predicated region fallthrough
CT: control target
= control target key end

     0   :  { %vm76_vm0 = vcmask 1040384   ;;  %v433_v0 = vmov 0.0   ;;  %vm36_vm1 = vcmask 72704   ;;  %vm434_vm2 = vmmov 0   ;;  %s550_s1 = inlined_call_operand.vmem [shape: f32[9,128], index: 1, kind: input, shape index: {}]   ;;  %s551_s0 = inlined_call_operand.vmem [shape: f32[104,9], index: 0, kind: input, shape index: {}]   ;;  %s552_s2 = inlined_call_operand.vmem [shape: f32[1,128], index: 2, kind: input, shape index: {}]   ;;  %s553_s3 = inlined_call_operand.vmem [shape: bf16[104,128], index: 3, kind: output, shape index: {}]  }
   0x1   :  { %384 = vmatprep.subr.mxu0 %v433_v0  ;;  %427 = vmatprep.subr.mxu1 %v433_v0  ;;  %v28_v1 = vld [vmem:[%s550_s1 + $0x8] sm:$0x1]  ;;  %v27_v2 = vld [vmem:[%s550_s1] sm:$0xff]  ;;  %v21_v4 = vld [vmem:[%s551_s0 + $0x38] sm:$0xff] }
   0x2   :  { %385 = vmatpush3.msk.msra.mxu0 %vm76_vm0, %v28_v1  ;;  %429 = vmatpush3.msk.msra.mxu1 %vm76_vm0, %v28_v1  ;;  %v14_v3 = vld [vmem:[%s551_s0] sm:$0xff]  ;;  %v15_v5 = vld [vmem:[%s551_s0 + $0x8] sm:$0xff]  ;;  %v16_v7 = vld [vmem:[%s551_s0 + $0x10] sm:$0xff] }
   0x3   :  { %386 = vmatprep.subr.mxu0 %v433_v0  ;;  %428 = vmatprep.subr.mxu1 %v433_v0  ;;  %v22_v6 = vld [vmem:[%s551_s0 + $0x40] sm:$0xff]  ;;  %v23_v8 = vld [vmem:[%s551_s0 + $0x48] sm:$0xff]  ;;  %v17_v9 = vld [vmem:[%s551_s0 + $0x18] sm:$0xff] }
   0x4   :  { %387 = vmatpush3.msra.mxu0 %v27_v2  ;;  %430 = vmatpush3.msra.mxu1 %v27_v2  ;;  %v24_v10 = vld [vmem:[%s551_s0 + $0x50] sm:$0xff]  ;;  %v18_v11 = vld [vmem:[%s551_s0 + $0x20] sm:$0xff]  ;;  %v25_v12 = vld [vmem:[%s551_s0 + $0x58] sm:$0xff] }
   0x5   :  { %388 = vmatprep.mubr.msk.f32.mxu0 %vm434_vm2, %v433_v0  ;;  %409 = vmatprep.mubr.msk.f32.mxu1 %vm434_vm2, %v433_v0  ;;  %v19_v13 = vld [vmem:[%s551_s0 + $0x28] sm:$0xff]  ;;  %v26_v14 = vld [vmem:[%s551_s0 + $0x60] sm:$0xff]  ;;  %v20_v15 = vld [vmem:[%s551_s0 + $0x30] sm:$0xff] }
   0x6   :  { %389 = vmatmul.mubr.msk.f32.vlgmr.msra.gmra.mxu0 %vm36_vm1, %v14_v3  ;;  %410 = vmatmul.mubr.msk.f32.vlgmr.msra.gmra.mxu1 %vm36_vm1, %v21_v4  ;;  %v293_v16 = vld [vmem:[%s552_s2] ss:$0 sm:$0xff] }
   0x7   :  { %391 = vmatprep.mubr.msk.f32.mxu0 %vm434_vm2, %v433_v0  ;;  %412 = vmatprep.mubr.msk.f32.mxu1 %vm434_vm2, %v433_v0 }
   0xa   :  { %392 = vmatmul.mubr.msk.f32.gmra.mxu0 %vm36_vm1, %v15_v5  ;;  %413 = vmatmul.mubr.msk.f32.gmra.mxu1 %vm36_vm1, %v22_v6 }
   0xb   :  { %394 = vmatprep.mubr.msk.f32.mxu0 %vm434_vm2, %v433_v0  ;;  %415 = vmatprep.mubr.msk.f32.mxu1 %vm434_vm2, %v433_v0 }
   0xe   :  { %395 = vmatmul.mubr.msk.f32.gmra.mxu0 %vm36_vm1, %v16_v7  ;;  %416 = vmatmul.mubr.msk.f32.gmra.mxu1 %vm36_vm1, %v23_v8 }
   0xf   :  { %397 = vmatprep.mubr.msk.f32.mxu0 %vm434_vm2, %v433_v0  ;;  %418 = vmatprep.mubr.msk.f32.mxu1 %vm434_vm2, %v433_v0 }
  0x12   :  { %398 = vmatmul.mubr.msk.f32.gmra.mxu0 %vm36_vm1, %v17_v9  ;;  %419 = vmatmul.mubr.msk.f32.gmra.mxu1 %vm36_vm1, %v24_v10 }
  0x13   :  { %400 = vmatprep.mubr.msk.f32.mxu0 %vm434_vm2, %v433_v0  ;;  %421 = vmatprep.mubr.msk.f32.mxu1 %vm434_vm2, %v433_v0 }
  0x16   :  { %401 = vmatmul.mubr.msk.f32.gmra.mxu0 %vm36_vm1, %v18_v11  ;;  %422 = vmatmul.mubr.msk.f32.gmra.mxu1 %vm36_vm1, %v25_v12 }
  0x17   :  { %403 = vmatprep.mubr.msk.f32.mxu0 %vm434_vm2, %v433_v0  ;;  %424 = vmatprep.mubr.msk.f32.mxu1 %vm434_vm2, %v433_v0 }
  0x1a   :  { %404 = vmatmul.mubr.msk.f32.gmra.mxu0 %vm36_vm1, %v19_v13  ;;  %425 = vmatmul.mubr.msk.f32.gmra.mxu1 %vm36_vm1, %v26_v14 }
  0x1b   :  { %406 = vmatprep.mubr.msk.f32.mxu0 %vm434_vm2, %v433_v0 }
  0x1e   :  { %407 = vmatmul.mubr.msk.f32.gmra.mxu0 %vm36_vm1, %v20_v15 }
  0xc6   :  { %v146_v17 = vpop.f32.mrf.mxu0  ;;  %v181_v18 = vpop.f32.mrf.mxu1 }
  0xc7   :  { %v147_v21 = vadd.f32 %v293_v16, %v146_v17  ;;  %v182_v0 = vadd.f32 %v293_v16, %v181_v18 }
  0xc8   :  { %v390_v19 = vpop.f32.mrf.mxu0  ;;  %v411_v20 = vpop.f32.mrf.mxu1 }
  0xc9   :  { %v210_v28 = vmax.f32 %v147_v21, 0.0  ;;  %v217_v9 = vmax.f32 %v182_v0, 0.0 }
  0xca   :  { %v151_v22 = vpop.f32.mrf.mxu0  ;;  %v186_v23 = vpop.f32.mrf.mxu1 }
  0xcb   :  { %v152_v24 = vadd.f32 %v293_v16, %v151_v22  ;;  %v187_v25 = vadd.f32 %v293_v16, %v186_v23 }
  0xcc   :  { %v393_v26 = vpop.f32.mrf.mxu0  ;;  %v414_v27 = vpop.f32.mrf.mxu1 }
  0xcd   :  { %v211_v29 = vmax.f32 %v152_v24, 0.0  ;;  %v218_v33 = vmax.f32 %v187_v25, 0.0 }
  0xce   :  { %v156_v30 = vpop.f32.mrf.mxu0  ;;  %v191_v31 = vpop.f32.mrf.mxu1 }
  0xcf   :  { %v337_v32 = vpack.c.bf16 %v211_v29, %v210_v28  ;;  %v192_v34 = vadd.f32 %v293_v16, %v191_v31  ;;  %v157_v37 = vadd.f32 %v293_v16, %v156_v30 }
  0xd0   :  { %v396_v35 = vpop.f32.mrf.mxu0  ;;  %v417_v36 = vpop.f32.mrf.mxu1 }
  0xd1   :  { %338 = vst [vmem:[%s553_s3] sm:$0xff] %v337_v32   ;;  %v219_v38 = vmax.f32 %v192_v34, 0.0  ;;  %v212_v46 = vmax.f32 %v157_v37, 0.0 }
  0xd2   :  { %v161_v39 = vpop.f32.mrf.mxu0  ;;  %v196_v40 = vpop.f32.mrf.mxu1 }
  0xd3   :  { %v357_v41 = vpack.c.bf16 %v219_v38, %v218_v33  ;;  %v162_v42 = vadd.f32 %v293_v16, %v161_v39  ;;  %v197_v43 = vadd.f32 %v293_v16, %v196_v40 }
  0xd4   :  { %v399_v44 = vpop.f32.mrf.mxu0  ;;  %v420_v45 = vpop.f32.mrf.mxu1 }
  0xd5   :  { %367 = vst [vmem:[%s553_s3 + $0x20] sm:$0xff] %v357_v41   ;;  %v213_v47 = vmax.f32 %v162_v42, 0.0  ;;  %v220_v51 = vmax.f32 %v197_v43, 0.0 }
  0xd6   :  { %v166_v48 = vpop.f32.mrf.mxu0  ;;  %v201_v49 = vpop.f32.mrf.mxu1 }
  0xd7   :  { %v342_v50 = vpack.c.bf16 %v213_v47, %v212_v46  ;;  %v202_v52 = vadd.f32 %v293_v16, %v201_v49  ;;  %v167_v55 = vadd.f32 %v293_v16, %v166_v48 }
  0xd8   :  { %v402_v53 = vpop.f32.mrf.mxu0  ;;  %v423_v54 = vpop.f32.mrf.mxu1 }
  0xd9   :  { %364 = vst [vmem:[%s553_s3 + $0x8] sm:$0xff] %v342_v50   ;;  %v221_v56 = vmax.f32 %v202_v52, 0.0  ;;  %v214_v1 = vmax.f32 %v167_v55, 0.0 }
  0xda   :  { %v171_v57 = vpop.f32.mrf.mxu0  ;;  %v206_v58 = vpop.f32.mrf.mxu1 }
  0xdb   :  { %v362_v59 = vpack.c.bf16 %v221_v56, %v220_v51  ;;  %v172_v60 = vadd.f32 %v293_v16, %v171_v57  ;;  %v207_v61 = vadd.f32 %v293_v16, %v206_v58 }
  0xdc   :  { %v405_v62 = vpop.f32.mrf.mxu0  ;;  %v426_v63 = vpop.f32.mrf.mxu1 }
  0xdd   :  { %368 = vst [vmem:[%s553_s3 + $0x28] sm:$0xff] %v362_v59   ;;  %v215_v2 = vmax.f32 %v172_v60, 0.0  ;;  %v222_v3 = vmax.f32 %v207_v61, 0.0 }
  0xde   :  { %v176_v4 = vpop.f32.mrf.mxu0 }
  0xdf   :  { %v347_v5 = vpack.c.bf16 %v215_v2, %v214_v1  ;;  %v333_v6 = vpack.c.bf16 %v222_v3, %v222_v3  ;;  %v177_v7 = vadd.f32 %v293_v16, %v176_v4 }
  0xe0   :  { %v408_v8 = vpop.f32.mrf.mxu0 }
  0xe1   :  { %365 = vst [vmem:[%s553_s3 + $0x10] sm:$0xff] %v347_v5   ;;  %288 = vst [vmem:[%s553_s3 + $0x30] sm:$0xf] %v333_v6  ;;  %v216_v10 = vmax.f32 %v177_v7, 0.0 }
  0xe3   :  { %v352_v11 = vpack.c.bf16 %v217_v9, %v216_v10 }
  0xe5   :  { %366 = vst [vmem:[%s553_s3 + $0x18] sm:$0xff] %v352_v11  }

// kernel: conv2d_subsampling4_forward.4
= control target key start
LH: loop header
LB: loop body
LE: loop exit
PB: predicated region body
PF: predicated region fallthrough
CT: control target
= control target key end

     0   :  { %vm197_vm0 = vcmask 261120   ;;  %s524_s1 = inlined_call_operand.vmem [shape: bf16[288,128], index: 1, kind: input, shape index: {}]   ;;  %s525_s0 = inlined_call_operand.vmem [shape: bf16[24,288], index: 0, kind: input, shape index: {}]   ;;  %s526_s2 = inlined_call_operand.vmem [shape: f32[1,128], index: 2, kind: input, shape index: {}]   ;;  %s527_s3 = inlined_call_operand.vmem [shape: bf16[24,128], index: 3, kind: output, shape index: {}]  }
   0x1   :  { %v401_v0 = vld [vmem:[%s524_s1 + $0x78] sm:$0xff]   ;;  %v403_v2 = vld [vmem:[%s524_s1 + $0x70] sm:$0xff]   ;;  %v405_v4 = vld [vmem:[%s524_s1 + $0x68] sm:$0xff]  }
   0x2   :  { %v402_v1 = vld [vmem:[%s524_s1 + $0x38] sm:$0xff]   ;;  %361 = vmatprep.subr.bf16.mxu0 %v401_v0  ;;  %v404_v3 = vld [vmem:[%s524_s1 + $0x30] sm:$0xff]   ;;  %v406_v5 = vld [vmem:[%s524_s1 + $0x28] sm:$0xff]  }
   0x3   :  { %362 = vmatpush3.bf16.msra.mxu0 %v402_v1  ;;  %v407_v6 = vld [vmem:[%s524_s1 + $0x60] sm:$0xff]   ;;  %v409_v8 = vld [vmem:[%s524_s1 + $0x58] sm:$0xff]   ;;  %v415_v9 = vld [vmem:[%s524_s1 + $0x88] sm:$0xff]  }
   0x4   :  { %363 = vmatprep.subr.bf16.mxu0 %v403_v2  ;;  %v408_v7 = vld [vmem:[%s524_s1 + $0x20] sm:$0xff]   ;;  %v410_v10 = vld [vmem:[%s524_s1 + $0x18] sm:$0xff]   ;;  %v411_v11 = vld [vmem:[%s524_s1 + $0x50] sm:$0xff]   ;;  %393 = vmatprep.subr.bf16.mxu1 %v415_v9 }
   0x5   :  { %v412_v12 = vld [vmem:[%s524_s1 + $0x10] sm:$0xff]   ;;  %394 = vmatpush3.bf16.msra.mxu1 %v415_v9  ;;  %v418_v13 = vld [vmem:[%s524_s1 + $0x80] sm:$0xff]   ;;  %v413_v14 = vld [vmem:[%s524_s1 + $0x48] sm:$0xff]  }
   0x6   :  { %395 = vmatprep.subr.bf16.mxu1 %v418_v13  ;;  %v421_v15 = vld [vmem:[%s525_s0 + $0x4] ss:$12 sps:$4 sm:$0xff]   ;;  %v422_v16 = vld [vmem:[%s525_s0 + $0x8] ss:$12 sps:$4 sm:$0xff]   ;;  %v423_v17 = vld [vmem:[%s525_s0 + $0x20] ss:$0 sps:$4 sm:$0xff]  }
   0x7   :  { %364 = vmatpush3.bf16.msra.mxu0 %v404_v3  ;;  %236 = vmatprep.mubr.bf16.mxu0 %v421_v15  ;;  %v414_v18 = vld [vmem:[%s524_s1 + $0x8] sm:$0xff]   ;;  %v416_v19 = vld [vmem:[%s524_s1 + $0x40] sm:$0xff]   ;;  %v19_v21 = vld [vmem:[%s525_s0 + $0x18] sm:$0xff] }
   0x8   :  { %365 = vmatprep.subr.bf16.mxu0 %v405_v4  ;;  %397 = vmatprep.mubr.msk.bf16.mxu1 %vm197_vm0, %v422_v16  ;;  %v417_v20 = vld [vmem:[%s524_s1] sm:$0xff]   ;;  %v328_v23 = vcombine.high %v19_v21, %v19_v21  ;;  %v327_v24 = vcombine.low %v19_v21, %v19_v21 }
   0x9   :  { %396 = vmatpush3.bf16.msra.mxu1 %v418_v13  ;;  %v419_v22 = vld [vmem:[%s525_s0] ss:$12 sps:$4 sm:$0xff]  }
   0xa   :  { %v323_v30 = vld [vmem:[%s526_s2] ss:$0 sm:$0xff] }
   0xb   :  { %366 = vmatpush3.bf16.msra.mxu0 %v406_v5 }
   0xc   :  { %367 = vmatprep.subr.bf16.mxu0 %v407_v6  ;;  %398 = vmatmul.mubr.msk.bf16.vlgmr.msra.gmra.mxu1 %vm197_vm0, %v423_v17 }
   0xf   :  { %368 = vmatpush3.bf16.msra.mxu0 %v408_v7 }
  0x10   :  { %369 = vmatprep.subr.bf16.mxu0 %v409_v8 }
  0x13   :  { %370 = vmatpush3.bf16.msra.mxu0 %v410_v10 }
  0x14   :  { %371 = vmatprep.subr.bf16.mxu0 %v411_v11 }
  0x17   :  { %372 = vmatpush3.bf16.msra.mxu0 %v412_v12 }
  0x18   :  { %373 = vmatprep.subr.bf16.mxu0 %v413_v14 }
  0x1b   :  { %374 = vmatpush3.bf16.msra.mxu0 %v414_v18 }
  0x1c   :  { %375 = vmatprep.subr.bf16.mxu0 %v416_v19 }
  0x1f   :  { %376 = vmatpush3.bf16.msra.mxu0 %v417_v20 }
  0x22   :  { %237 = vmatmul.mubr.bf16.vlgmr.msra.gmra.mxu0 %v419_v22 }
  0x23   :  { %244 = vmatprep.mubr.bf16.mxu0 %v328_v23 }
  0x2a   :  { %245 = vmatmul.mubr.bf16.gmra.mxu0 %v327_v24 }
  0xcc   :  { %v399_v25 = vpop.f32.mrf.mxu1 }
  0xce   :  { %v286_v26 = vpop.f32.mrf.mxu1 }
  0xd0   :  { %v400_v27 = vpop.f32.mrf.mxu1 }
  0xd2   :  { %v289_v39 = vpop.f32.mrf.mxu1 }
  0xe2   :  { %v377_v28 = vpop.f32.mrf.mxu0 }
  0xe4   :  { %v378_v29 = vpop.f32.mrf.mxu0 }
  0xe5   :  { %v379_v31 = vadd.f32 %v378_v29, %v377_v28 }
  0xe6   :  { %v380_v32 = vpop.f32.mrf.mxu0 }
  0xe7   :  { %v239_v33 = vadd.f32 %v379_v31, %v323_v30 }
  0xe8   :  { %v381_v34 = vpop.f32.mrf.mxu0 }
  0xe9   :  { %v382_v35 = vadd.f32 %v381_v34, %v380_v32  ;;  %v287_v37 = vadd.f32 %v286_v26, %v239_v33 }
  0xea   :  { %v383_v36 = vpop.f32.mrf.mxu0 }
  0xeb   :  { %v242_v38 = vadd.f32 %v382_v35, %v323_v30  ;;  %v300_v44 = vmax.f32 %v287_v37, 0.0 }
  0xec   :  { %v384_v40 = vpop.f32.mrf.mxu0 }
  0xed   :  { %v290_v41 = vadd.f32 %v289_v39, %v242_v38  ;;  %v385_v42 = vadd.f32 %v384_v40, %v383_v36 }
  0xee   :  { %v386_v43 = vpop.f32.mrf.mxu0 }
  0xef   :  { %v301_v45 = vmax.f32 %v290_v41, 0.0  ;;  %v247_v46 = vadd.f32 %v385_v42, %v323_v30 }
  0xf0   :  { %v387_v47 = vpop.f32.mrf.mxu0 }
  0xf1   :  { %v359_v48 = vpack.c.bf16 %v301_v45, %v300_v44  ;;  %v295_v49 = vadd.f32 %v399_v25, %v247_v46 }
  0xf3   :  { %360 = vst [vmem:[%s527_s3] sm:$0xff] %v359_v48   ;;  %v302_v50 = vmax.f32 %v295_v49, 0.0 }
  0xf5   :  { %v355_v51 = vpack.c.bf16 %v302_v50, %v302_v50 }
  0xf7   :  { %318 = vst [vmem:[%s527_s3 + $0x8] sm:$0xf] %v355_v51 }

// kernel: conv2d_subsampling4_forward.5
= control target key start
LH: loop header
LB: loop body
LE: loop exit
PB: predicated region body
PF: predicated region fallthrough
CT: control target
= control target key end

     0   :  { %s834_s15 = smov 0   ;;  %s836_s16 = smov 0   ;;  %s953_s0 = inlined_call_operand.vmem [shape: bf16[2,8,384], index: 0, kind: input, shape index: {}]   ;;  %s954_s1 = inlined_call_operand.vmem [shape: bf16[384,128], index: 1, kind: input, shape index: {}]   ;;  %s955_s2 = inlined_call_operand.vmem [shape: f32[1,128], index: 2, kind: input, shape index: {}]   ;;  %s956_s3 = inlined_call_operand.vmem [shape: f32[8,128], index: 3, kind: input, shape index: {}]   ;;  %s957_s4 = inlined_call_operand.vmem [shape: f32[2,8,128], index: 4, kind: output, shape index: {}]  }
   0x1   :  { %s838_s17 = smov 0  }
   0x2 LB: > { %s26_s18 = sadd.s32 1, %s801_s16  ;;  %p645_p0 = scmp.ge.s32.totalorder %s805_s17, 1  ;;  %s805_s17 = sphi %s838_s17, %s14_s17   ;;  %s801_s16 = sphi %s836_s16, %s959_s16   ;;  %s797_s15 = sphi %s834_s15, %s958_s15  }
   0x3   : > { %p28_p1 = scmp.ge.s32.totalorder %s26_s18, 2  ;;  %p191_p2 = scmp.lt.s32.totalorder %s805_s17, 3 }
   0x5   : > { %s961_s18 = smov (%p28_p1, %s26_s18), 0  ;;  %p192_p3 = pnand %p645_p0, %p191_p2 }
   0x6   : > { %p227_p4 = scmp.lt.s32.totalorder (!%p192_p3), %s797_s15, 1 }
   0x7   : > { %195 = sbr.rel (%p192_p3) target bundleno = 251 (0xfb), region = 36 }
   0xc   : > { %v756_v0 = vld [vmem:[%s954_s1 + $0x78] sm:$0xff]   ;;  %v807_v1 = vmov 0.0   ;;  %v759_v4 = vld [vmem:[%s954_s1 + $0x70] sm:$0xff]   ;;  %vm808_vm0 = vmmov 0   ;;  %v762_v7 = vld [vmem:[%s954_s1 + $0x68] sm:$0xff]   ;;  %s963_s15 = smov (!%p227_p4, %s797_s15), 1 }
   0xd   : > { %709 = vmatprep.subr.bf16.mxu1 %v807_v1  ;;  %v757_v2 = vld [vmem:[%s954_s1 + $0x38] sm:$0xff]   ;;  %678 = vmatprep.subr.bf16.mxu0 %v756_v0  ;;  %v760_v5 = vld [vmem:[%s954_s1 + $0x30] sm:$0xff]   ;;  %v763_v8 = vld [vmem:[%s954_s1 + $0x28] sm:$0xff]   ;;  %s729_s29 = smul.u32 12, %s963_s15 }
   0xe   : > { %v758_v3 = vld [vmem:[%s954_s1 + $0xb8] sm:$0xff]   ;;  %679 = vmatpush3.bf16.msra.mxu0 %v757_v2  ;;  %725 = vmatprep.mubr.msk.bf16.mxu1 %vm808_vm0, %v807_v1  ;;  %v761_v6 = vld [vmem:[%s954_s1 + $0xb0] sm:$0xff]   ;;  %v764_v9 = vld [vmem:[%s954_s1 + $0xa8] sm:$0xff]  }
   0xf   : > { %710 = vmatpush3.bf16.msra.mxu1 %v758_v3  ;;  %680 = vmatprep.subr.bf16.mxu0 %v759_v4  ;;  %v765_v10 = vld [vmem:[%s954_s1 + $0x60] sm:$0xff]   ;;  %v768_v13 = vld [vmem:[%s954_s1 + $0x58] sm:$0xff]   ;;  %v771_v16 = vld [vmem:[%s954_s1 + $0x50] sm:$0xff]   ;;  %s235_s12 = scalar_lea.vmem %s953_s0, %s729_s29  ;;  %s647_s29 = sshll.u32 %s963_s15, 3 }
  0x10   : > { %711 = vmatprep.subr.bf16.mxu1 %v807_v1  ;;  %v766_v11 = vld [vmem:[%s954_s1 + $0x20] sm:$0xff]   ;;  %v769_v14 = vld [vmem:[%s954_s1 + $0x18] sm:$0xff]   ;;  %v772_v17 = vld [vmem:[%s954_s1 + $0x10] sm:$0xff]   ;;  %s246_s8 = scalar_lea.vmem %s957_s4, %s647_s29 }
  0x11   : > { %v767_v12 = vld [vmem:[%s954_s1 + $0xa0] sm:$0xff]   ;;  %v770_v15 = vld [vmem:[%s954_s1 + $0x98] sm:$0xff]   ;;  %v773_v18 = vld [vmem:[%s954_s1 + $0x90] sm:$0xff]  }
  0x12   : > { %681 = vmatpush3.bf16.msra.mxu0 %v760_v5  ;;  %v774_v19 = vld [vmem:[%s954_s1 + $0x48] sm:$0xff]   ;;  %v777_v22 = vld [vmem:[%s954_s1 + $0x40] sm:$0xff]  }
  0x13   : > { %712 = vmatpush3.bf16.msra.mxu1 %v761_v6  ;;  %682 = vmatprep.subr.bf16.mxu0 %v762_v7  ;;  %v775_v20 = vld [vmem:[%s954_s1 + $0x8] sm:$0xff]   ;;  %v248_v23 = vld [vmem:[%s235_s12] sm:$0xff] }
  0x14   : > { %713 = vmatprep.subr.bf16.mxu1 %v807_v1  ;;  %v776_v21 = vld [vmem:[%s954_s1 + $0x88] sm:$0xff]   ;;  %v650_v24 = vcombine.high %v248_v23, %v248_v23  ;;  %v778_v25 = vld [vmem:[%s954_s1] sm:$0xff]   ;;  %v649_v27 = vcombine.low %v248_v23, %v248_v23 }
  0x15   : > { %v779_v26 = vld [vmem:[%s954_s1 + $0x80] sm:$0xff]   ;;  %v782_v28 = vld [vmem:[%s235_s12 + $0x8] ss:$0 sps:$4 sm:$0xff]  }
  0x16   : > { %683 = vmatpush3.bf16.msra.mxu0 %v763_v8  ;;  %492 = vmatprep.mubr.bf16.mxu0 %v650_v24  ;;  %v648_v31 = vld [vmem:[%s955_s2] ss:$0 sm:$0xff] }
  0x17   : > { %714 = vmatpush3.bf16.msra.mxu1 %v764_v9  ;;  %684 = vmatprep.subr.bf16.mxu0 %v765_v10  ;;  %v541_v41 = vld [vmem:[%s956_s3] sm:$0xff] }
  0x18   : > { %715 = vmatprep.subr.bf16.mxu1 %v807_v1 }
  0x1a   : > { %685 = vmatpush3.bf16.msra.mxu0 %v766_v11 }
  0x1b   : > { %716 = vmatpush3.bf16.msra.mxu1 %v767_v12  ;;  %686 = vmatprep.subr.bf16.mxu0 %v768_v13 }
  0x1c   : > { %717 = vmatprep.subr.bf16.mxu1 %v807_v1 }
  0x1e   : > { %687 = vmatpush3.bf16.msra.mxu0 %v769_v14 }
  0x1f   : > { %718 = vmatpush3.bf16.msra.mxu1 %v770_v15  ;;  %688 = vmatprep.subr.bf16.mxu0 %v771_v16 }
  0x20   : > { %719 = vmatprep.subr.bf16.mxu1 %v807_v1 }
  0x22   : > { %689 = vmatpush3.bf16.msra.mxu0 %v772_v17 }
  0x23   : > { %720 = vmatpush3.bf16.msra.mxu1 %v773_v18  ;;  %690 = vmatprep.subr.bf16.mxu0 %v774_v19 }
  0x24   : > { %721 = vmatprep.subr.bf16.mxu1 %v807_v1 }
  0x26   : > { %691 = vmatpush3.bf16.msra.mxu0 %v775_v20 }
  0x27   : > { %722 = vmatpush3.bf16.msra.mxu1 %v776_v21  ;;  %692 = vmatprep.subr.bf16.mxu0 %v777_v22 }
  0x28   : > { %723 = vmatprep.subr.bf16.mxu1 %v807_v1 }
  0x2a   : > { %693 = vmatpush3.bf16.msra.mxu0 %v778_v25 }
  0x2b   : > { %724 = vmatpush3.bf16.msra.mxu1 %v779_v26 }
  0x2d   : > { %493 = vmatmul.mubr.bf16.vlgmr.msra.gmra.mxu0 %v649_v27 }
  0x2e   : > { %726 = vmatmul.mubr.bf16.vlgmr.msra.gmra.mxu1 %v782_v28 }
  0xed   : > { %v694_v29 = vpop.f32.mrf.mxu0 }
  0xee   : > { %v534_v30 = vpop.f32.mrf.mxu1 }
  0xef   : > { %v695_v32 = vpop.f32.mrf.mxu0 }
  0xf0   : > { %v696_v33 = vadd.f32 %v695_v32, %v694_v29  ;;  %v727_v34 = vpop.f32.mrf.mxu1 }
  0xf1   : > { %v697_v35 = vpop.f32.mrf.mxu0 }
  0xf2   : > { %v495_v36 = vadd.f32 %v696_v33, %v648_v31  ;;  %v537_v37 = vpop.f32.mrf.mxu1 }
  0xf3   : > { %v698_v38 = vpop.f32.mrf.mxu0 }
  0xf4   : > { %v535_v39 = vadd.f32 %v534_v30, %v495_v36  ;;  %v728_v40 = vpop.f32.mrf.mxu1 }
  0xf6   : > { %v540_v42 = vmul.f32 5.656854, %v535_v39 }
  0xf8   : > { %v542_v43 = vadd.f32 %v541_v41, %v540_v42 }
  0xfa   : > { %543 = vst [vmem:[%s246_s8] sm:$0xff] %v542_v43 }
  0xfb PF: > { %s14_s17 = sadd.s32 1, %s805_s17   ;;  %s958_s15 = smov %s801_s16 }
  0xfc   : > { %p11_p5 = scmp.ge.s32.totalorder %s14_s17, 4   ;;  %s959_s16 = smov %s961_s18 }
  0xfe   :  { %13 = sbr.rel (!%p11_p5) target bundleno = 2 (0x2), region = 69 }

</bundles_post_ra>
